<compile_context>
chip_gen: v5e
topology: v5e:2x2
jax: 0.10.0
libtpu: 0.0.40
codegen_flags: <defaults>
</compile_context>

<pallas_src>
import functools

import jax
import jax.numpy as jnp
from jax import lax
from jax.experimental import pallas as pl
from jax.experimental.pallas import tpu as pltpu


def _tversky_partial_kernel(x_ref, t_ref, tp_ref, sp_ref, st_ref, *,
                            apply_softmax, n_inner, n_tiles_total, tile_rows,
                            hw, mask_tail, guard_dups):
    """Accumulates per-class partial sums for one (batch, pixel-group) block.

    x_ref : (C, TR, 128) logits tile (native dtype, cast to f32 here)
    t_ref : (TR, 128)    labels tile (int8 / int32)
    tp_ref: (C, 128) f32  sum_p  p * onehot   (lane-wide partials)
    sp_ref: (C, 128) f32  sum_p  p
    st_ref: (C, 128) f32  sum_p  onehot
    """
    o = pl.program_id(1)
    i = pl.program_id(2)

    @pl.when(i == 0)
    def _():
        tp_ref[...] = jnp.zeros_like(tp_ref)
        sp_ref[...] = jnp.zeros_like(sp_ref)
        st_ref[...] = jnp.zeros_like(st_ref)

    x = x_ref[...].astype(jnp.float32)                 # (C, TR, 128)
    if apply_softmax:
        # Class axis is the leading (slab) dim -> C-1 elementwise VPU ops.
        m = jnp.max(x, axis=0, keepdims=True)          # (1, TR, 128)
        e = jnp.exp(x - m)                             # EUP
        s = jnp.sum(e, axis=0, keepdims=True)
        p = e * pl.reciprocal(s, approx=False)         # EUP recip, exact
    else:
        p = x

    tgt = t_ref[...].astype(jnp.int32)                 # (TR, 128)
    cls = lax.broadcasted_iota(jnp.int32, p.shape, 0)  # (C, TR, 128)
    match = cls == tgt[None]                           # fused one-hot (bool)

    def accumulate(p_v, match_v):
        # Reduce only the sublane (rows) axis per step; lanes stay dense.
        tp_ref[...] += jnp.sum(jnp.where(match_v, p_v, 0.0), axis=1)
        sp_ref[...] += jnp.sum(p_v, axis=1)
        st_ref[...] += jnp.sum(match_v.astype(jnp.float32), axis=1)

    tile_idx = o * n_inner + i                         # global pixel-tile id

    if mask_tail:
        last = n_tiles_total - 1

        @pl.when(tile_idx == last)
        def _():
            # Undefined tail contents: mask BOTH p and match by pixel index.
            row = lax.broadcasted_iota(jnp.int32, (tile_rows, 128), 0)
            lane = lax.broadcasted_iota(jnp.int32, (tile_rows, 128), 1)
            pix = tile_idx * (tile_rows * 128) + row * 128 + lane
            valid = (pix < hw)[None]                   # (1, TR, 128)
            accumulate(jnp.where(valid, p, 0.0),
                       jnp.logical_and(match, valid))

        @pl.when(tile_idx < last)
        def _():
            accumulate(p, match)
    elif guard_dups:
        # Duplicate (clamped) tiles from the megacore split must not count.
        @pl.when(tile_idx < n_tiles_total)
        def _():
            accumulate(p, match)
    else:
        accumulate(p, match)


def _vmem_budgets():
    """Generation-aware VMEM budgets (v7x: 64 MiB physical; v5e/v6e: 128)."""
    try:
        cap = int(pltpu.get_tpu_info().vmem_capacity_bytes)
    except Exception:
        cap = 64 << 20                                 # conservative fallback
    tile_budget = min(cap // 4, 32 << 20)              # inputs + live temps
    vmem_limit = min(cap // 2, 64 << 20)               # scoped-VMEM limit
    return tile_budget, vmem_limit


def _pick_tile_rows(rows, n_classes, x_itemsize, t_itemsize, budget):
    """Biggest row tile (pixels = rows*128) whose double-buffered input DMA
    plus ~6 live f32 (C, tile, 128) temporaries fit the VMEM budget."""
    per_row = 2 * 128 * (n_classes * x_itemsize + t_itemsize) \
        + 6 * n_classes * 128 * 4
    t = max(32, budget // per_row)
    if t >= rows:
        return rows                                    # single tile (full dim)
    t = max(32, (t // 32) * 32)                        # bf16/int8 packing safe
    return min(t, rows)


def tversky_loss(inputs, target, weight=None, *, n_classes,
                 alpha=0.3, beta=0.7, smooth=1e-5, softmax=True,
                 tile_rows=None):
    """inputs: (N, C, H, W) float logits, target: (N, H, W) int labels."""
    N, C, H, W = inputs.shape
    assert C == n_classes
    HW = H * W

    hw128 = pl.cdiv(HW, 128) * 128
    rows = hw128 // 128
    pad = hw128 - HW

    # Native dtype for logits (no host f32 upcast); int8 labels when possible.
    lbl_dtype = jnp.int8 if n_classes <= 127 else jnp.int32
    x = inputs.reshape(N, C, HW)
    t = target.reshape(N, HW).astype(lbl_dtype)
    if pad:
        # Only when H*W % 128 != 0 (needed for the packed (rows,128) layout).
        x = jnp.pad(x, ((0, 0), (0, 0), (0, pad)))
        t = jnp.pad(t, ((0, 0), (0, pad)), constant_values=-1)
    x = x.reshape(N, C, rows, 128)
    t = t.reshape(N, rows, 128)

    tile_budget, vmem_limit = _vmem_budgets()
    if tile_rows is None:
        tile_rows = _pick_tile_rows(rows, C, x.dtype.itemsize,
                                    t.dtype.itemsize, tile_budget)
    if tile_rows >= rows:
        tile_rows = rows
    else:
        tile_rows = min(max(32, (tile_rows // 32) * 32), rows)

    n_tiles_total = pl.cdiv(rows, tile_rows)

    # Megacore (v7x): split the pixel tiles across a 2nd parallel axis when
    # the batch axis alone cannot feed both TensorCores.
    if N == 1 and n_tiles_total >= 2:
        n_outer = 2
        n_inner = pl.cdiv(n_tiles_total, n_outer)
    else:
        n_outer = 1
        n_inner = n_tiles_total

    mask_tail = (n_tiles_total * tile_rows * 128) > HW
    guard_dups = (n_outer * n_inner) > n_tiles_total

    if n_outer == 1:
        x_map = lambda n, o, i: (n, 0, i, 0)
        t_map = lambda n, o, i: (n, i, 0)
    else:
        last_blk = n_tiles_total - 1
        x_map = lambda n, o, i: (n, 0, jnp.minimum(o * n_inner + i, last_blk), 0)
        t_map = lambda n, o, i: (n, jnp.minimum(o * n_inner + i, last_blk), 0)

    kernel = functools.partial(
        _tversky_partial_kernel,
        apply_softmax=bool(softmax),
        n_inner=n_inner, n_tiles_total=n_tiles_total,
        tile_rows=tile_rows, hw=HW,
        mask_tail=mask_tail, guard_dups=guard_dups)

    part_shape = jax.ShapeDtypeStruct((N, n_outer, C, 128), jnp.float32)
    out_spec = pl.BlockSpec((None, None, C, 128), lambda n, o, i: (n, o, 0, 0))

    tp_p, sp_p, st_p = pl.pallas_call(
        kernel,
        out_shape=(part_shape, part_shape, part_shape),
        grid=(N, n_outer, n_inner),
        in_specs=[
            pl.BlockSpec((None, C, tile_rows, 128), x_map),   # logits
            pl.BlockSpec((None, tile_rows, 128), t_map),      # labels
        ],
        out_specs=(out_spec, out_spec, out_spec),
        compiler_params=pltpu.CompilerParams(
            dimension_semantics=("parallel", "parallel", "arbitrary"),
            vmem_limit_bytes=int(vmem_limit)),
    )(x, t)

    # Tiny scalar epilogue in plain JAX: fold lane/batch/group partial sums.
    tp = jnp.sum(tp_p, axis=(0, 1, 3))                 # (C,)
    sp = jnp.sum(sp_p, axis=(0, 1, 3))
    st = jnp.sum(st_p, axis=(0, 1, 3))
    fp = sp - tp
    fn = st - tp
    tversky = (tp + smooth) / (tp + alpha * fp + beta * fn + smooth)
    if weight is None:
        w = jnp.ones((C,), jnp.float32)
    else:
        w = jnp.asarray(weight, jnp.float32).reshape(C)
    return jnp.sum((1.0 - tversky) * w) / n_classes


def _tversky_loss_ref(inputs, target, weight=None, *, n_classes,
                      alpha, beta, smooth):
    p = jax.nn.softmax(inputs.astype(jnp.float32), axis=1)
    onehot = jnp.transpose(
        jax.nn.one_hot(target, n_classes, dtype=jnp.float32), (0, 3, 1, 2))
    if weight is None:
        weight = [1.0] * n_classes
    loss = 0.0
    for i in range(n_classes):
        tp = jnp.sum(p[:, i] * onehot[:, i])
        fp = jnp.sum(p[:, i] * (1.0 - onehot[:, i]))
        fn = jnp.sum((1.0 - p[:, i]) * onehot[:, i])
        tversky = (tp + smooth) / (tp + alpha * fp + beta * fn + smooth)
        loss += (1.0 - tversky) * weight[i]
    return loss / n_classes


if __name__ == "__main__":
    n_classes = 4
    N, C, H, W = 2, n_classes, 16, 16   # inputs (2, 4, 16, 16), target (2, 16, 16)

    key = jax.random.PRNGKey(0)
    k1, k2 = jax.random.split(key)
    logits = jax.random.normal(k1, (N, C, H, W), dtype=jnp.float32)
    target = jax.random.randint(k2, (N, H, W), 0, n_classes, dtype=jnp.int32)

    # Unweighted case vs reference.
    loss = tversky_loss(logits, target, n_classes=n_classes,
                        alpha=0.3, beta=0.7, smooth=1e-5, softmax=True)
    loss = jax.block_until_ready(loss)
    ref = _tversky_loss_ref(logits, target, n_classes=n_classes,
                            alpha=0.3, beta=0.7, smooth=1e-5)
    assert jnp.allclose(loss, ref, atol=1e-5, rtol=1e-5), (loss, ref)

    # Weighted case.
    wts = jnp.asarray([1.0, 2.0, 0.5, 1.5], jnp.float32)
    loss_w = tversky_loss(logits, target, weight=wts, n_classes=n_classes,
                          alpha=0.3, beta=0.7, smooth=1e-5, softmax=True)
    loss_w = jax.block_until_ready(loss_w)
    ref_w = _tversky_loss_ref(logits, target, weight=wts, n_classes=n_classes,
                              alpha=0.3, beta=0.7, smooth=1e-5)
    assert jnp.allclose(loss_w, ref_w, atol=1e-5, rtol=1e-5), (loss_w, ref_w)

    print("KERNEL_OK")
</pallas_src>

<mosaic_0001>
module attributes {stable_mosaic.version = 11 : i64} {
  func.func @_tversky_partial_kernel(%arg0: i32, %arg1: i32, %arg2: i32, %arg3: memref<1x4x2x128xf32, #tpu.memory_space<vmem>>, %arg4: memref<1x2x128xi8, #tpu.memory_space<vmem>>, %arg5: memref<1x1x4x128xf32, #tpu.memory_space<vmem>>, %arg6: memref<1x1x4x128xf32, #tpu.memory_space<vmem>>, %arg7: memref<1x1x4x128xf32, #tpu.memory_space<vmem>>) attributes {dimension_semantics = [#tpu.dimension_semantics<parallel>, #tpu.dimension_semantics<parallel>, #tpu.dimension_semantics<arbitrary>], iteration_bounds = array<i64: 2, 1, 1>, scalar_prefetch = 0 : i64, scratch_operands = 0 : i64, tpu.core_type = #tpu.core_type<tc>, window_params = [{transform_indices = @transform_0, window_bounds = array<i64: 1, 4, 2, 128>}, {transform_indices = @transform_1, window_bounds = array<i64: 1, 2, 128>}, {transform_indices = @transform_2, window_bounds = array<i64: 1, 1, 4, 128>}, {transform_indices = @transform_3, window_bounds = array<i64: 1, 1, 4, 128>}, {transform_indices = @transform_4, window_bounds = array<i64: 1, 1, 4, 128>}]} {
    %c0_i32 = arith.constant 0 : i32
    %0 = arith.cmpi eq, %arg2, %c0_i32 : i32
    %1 = arith.extui %0 : i1 to i32
    %c0_i32_0 = arith.constant 0 : i32
    %2 = arith.cmpi ne, %1, %c0_i32_0 : i32
    scf.if %2 {
      %cst_36 = arith.constant 0.000000e+00 : f32
      %47 = vector.broadcast %cst_36 : f32 to vector<4x128xf32>
      %c0_37 = arith.constant 0 : index
      %c0_38 = arith.constant 0 : index
      %c0_39 = arith.constant 0 : index
      %c0_40 = arith.constant 0 : index
      %48 = vector.load %arg5[%c0_37, %c0_38, %c0_39, %c0_40] : memref<1x1x4x128xf32, #tpu.memory_space<vmem>>, vector<1x1x4x128xf32>
      %49 = vector.shape_cast %48 : vector<1x1x4x128xf32> to vector<4x128xf32>
      %50 = vector.shape_cast %47 : vector<4x128xf32> to vector<1x1x4x128xf32>
      tpu.vector_store %arg5[%c0_37, %c0_38, %c0_39, %c0_40], %50 {strides = array<i32>} : memref<1x1x4x128xf32, #tpu.memory_space<vmem>>, vector<1x1x4x128xf32>,
      %cst_41 = arith.constant 0.000000e+00 : f32
      %51 = vector.broadcast %cst_41 : f32 to vector<4x128xf32>
      %c0_42 = arith.constant 0 : index
      %c0_43 = arith.constant 0 : index
      %c0_44 = arith.constant 0 : index
      %c0_45 = arith.constant 0 : index
      %52 = vector.load %arg6[%c0_42, %c0_43, %c0_44, %c0_45] : memref<1x1x4x128xf32, #tpu.memory_space<vmem>>, vector<1x1x4x128xf32>
      %53 = vector.shape_cast %52 : vector<1x1x4x128xf32> to vector<4x128xf32>
      %54 = vector.shape_cast %51 : vector<4x128xf32> to vector<1x1x4x128xf32>
      tpu.vector_store %arg6[%c0_42, %c0_43, %c0_44, %c0_45], %54 {strides = array<i32>} : memref<1x1x4x128xf32, #tpu.memory_space<vmem>>, vector<1x1x4x128xf32>,
      %cst_46 = arith.constant 0.000000e+00 : f32
      %55 = vector.broadcast %cst_46 : f32 to vector<4x128xf32>
      %c0_47 = arith.constant 0 : index
      %c0_48 = arith.constant 0 : index
      %c0_49 = arith.constant 0 : index
      %c0_50 = arith.constant 0 : index
      %56 = vector.load %arg7[%c0_47, %c0_48, %c0_49, %c0_50] : memref<1x1x4x128xf32, #tpu.memory_space<vmem>>, vector<1x1x4x128xf32>
      %57 = vector.shape_cast %56 : vector<1x1x4x128xf32> to vector<4x128xf32>
      %58 = vector.shape_cast %55 : vector<4x128xf32> to vector<1x1x4x128xf32>
      tpu.vector_store %arg7[%c0_47, %c0_48, %c0_49, %c0_50], %58 {strides = array<i32>} : memref<1x1x4x128xf32, #tpu.memory_space<vmem>>, vector<1x1x4x128xf32>,
    } else {
    }
    %c0 = arith.constant 0 : index
    %c0_1 = arith.constant 0 : index
    %c0_2 = arith.constant 0 : index
    %c0_3 = arith.constant 0 : index
    %3 = vector.load %arg3[%c0, %c0_1, %c0_2, %c0_3] : memref<1x4x2x128xf32, #tpu.memory_space<vmem>>, vector<1x4x2x128xf32>
    %4 = vector.shape_cast %3 : vector<1x4x2x128xf32> to vector<4x2x128xf32>
    %cst = arith.constant dense<0xFF800000> : vector<2x128xf32>
    %5 = vector.multi_reduction <maximumf>, %4, %cst [0] : vector<4x2x128xf32> to vector<2x128xf32>
    %6 = vector.shape_cast %5 : vector<2x128xf32> to vector<1x2x128xf32>
    %7 = vector.broadcast %6 : vector<1x2x128xf32> to vector<4x2x128xf32>
    %8 = arith.subf %4, %7 : vector<4x2x128xf32>
    %9 = math.exp %8 : vector<4x2x128xf32>
    %cst_4 = arith.constant dense<0.000000e+00> : vector<2x128xf32>
    %10 = vector.multi_reduction <add>, %9, %cst_4 [0] : vector<4x2x128xf32> to vector<2x128xf32>
    %11 = vector.shape_cast %10 : vector<2x128xf32> to vector<1x2x128xf32>
    %12 = tpu.reciprocal %11 : vector<1x2x128xf32> -> vector<1x2x128xf32>
    %13 = vector.broadcast %12 : vector<1x2x128xf32> to vector<4x2x128xf32>
    %14 = arith.mulf %9, %13 : vector<4x2x128xf32>
    %c0_5 = arith.constant 0 : index
    %c0_6 = arith.constant 0 : index
    %c0_7 = arith.constant 0 : index
    %15 = vector.load %arg4[%c0_5, %c0_6, %c0_7] : memref<1x2x128xi8, #tpu.memory_space<vmem>>, vector<1x2x128xi8>
    %16 = vector.shape_cast %15 : vector<1x2x128xi8> to vector<2x128xi8>
    %17 = arith.extsi %16 : vector<2x128xi8> to vector<2x128xi32>
    %18 = tpu.iota {dimensions = array<i32: 0>} : vector<4x2x128xi32>
    %19 = vector.shape_cast %17 : vector<2x128xi32> to vector<1x2x128xi32>
    %20 = vector.broadcast %19 : vector<1x2x128xi32> to vector<4x2x128xi32>
    %21 = arith.cmpi eq, %18, %20 : vector<4x2x128xi32>
    %c0_8 = arith.constant 0 : index
    %c0_9 = arith.constant 0 : index
    %c0_10 = arith.constant 0 : index
    %c0_11 = arith.constant 0 : index
    %22 = vector.load %arg5[%c0_8, %c0_9, %c0_10, %c0_11] : memref<1x1x4x128xf32, #tpu.memory_space<vmem>>, vector<1x1x4x128xf32>
    %23 = vector.shape_cast %22 : vector<1x1x4x128xf32> to vector<4x128xf32>
    %cst_12 = arith.constant 0.000000e+00 : f32
    %24 = vector.broadcast %cst_12 : f32 to vector<4x2x128xf32>
    %25 = arith.select %21, %14, %24 : vector<4x2x128xi1>, vector<4x2x128xf32>
    %cst_13 = arith.constant dense<0.000000e+00> : vector<4x128xf32>
    %26 = vector.multi_reduction <add>, %25, %cst_13 [1] : vector<4x2x128xf32> to vector<4x128xf32>
    %27 = arith.addf %23, %26 : vector<4x128xf32>
    %c0_14 = arith.constant 0 : index
    %c0_15 = arith.constant 0 : index
    %c0_16 = arith.constant 0 : index
    %c0_17 = arith.constant 0 : index
    %28 = vector.load %arg5[%c0_14, %c0_15, %c0_16, %c0_17] : memref<1x1x4x128xf32, #tpu.memory_space<vmem>>, vector<1x1x4x128xf32>
    %29 = vector.shape_cast %28 : vector<1x1x4x128xf32> to vector<4x128xf32>
    %30 = vector.shape_cast %27 : vector<4x128xf32> to vector<1x1x4x128xf32>
    tpu.vector_store %arg5[%c0_14, %c0_15, %c0_16, %c0_17], %30 {strides = array<i32>} : memref<1x1x4x128xf32, #tpu.memory_space<vmem>>, vector<1x1x4x128xf32>,
    %c0_18 = arith.constant 0 : index
    %c0_19 = arith.constant 0 : index
    %c0_20 = arith.constant 0 : index
    %c0_21 = arith.constant 0 : index
    %31 = vector.load %arg6[%c0_18, %c0_19, %c0_20, %c0_21] : memref<1x1x4x128xf32, #tpu.memory_space<vmem>>, vector<1x1x4x128xf32>
    %32 = vector.shape_cast %31 : vector<1x1x4x128xf32> to vector<4x128xf32>
    %cst_22 = arith.constant dense<0.000000e+00> : vector<4x128xf32>
    %33 = vector.multi_reduction <add>, %14, %cst_22 [1] : vector<4x2x128xf32> to vector<4x128xf32>
    %34 = arith.addf %32, %33 : vector<4x128xf32>
    %c0_23 = arith.constant 0 : index
    %c0_24 = arith.constant 0 : index
    %c0_25 = arith.constant 0 : index
    %c0_26 = arith.constant 0 : index
    %35 = vector.load %arg6[%c0_23, %c0_24, %c0_25, %c0_26] : memref<1x1x4x128xf32, #tpu.memory_space<vmem>>, vector<1x1x4x128xf32>
    %36 = vector.shape_cast %35 : vector<1x1x4x128xf32> to vector<4x128xf32>
    %37 = vector.shape_cast %34 : vector<4x128xf32> to vector<1x1x4x128xf32>
    tpu.vector_store %arg6[%c0_23, %c0_24, %c0_25, %c0_26], %37 {strides = array<i32>} : memref<1x1x4x128xf32, #tpu.memory_space<vmem>>, vector<1x1x4x128xf32>,
    %c0_27 = arith.constant 0 : index
    %c0_28 = arith.constant 0 : index
    %c0_29 = arith.constant 0 : index
    %c0_30 = arith.constant 0 : index
    %38 = vector.load %arg7[%c0_27, %c0_28, %c0_29, %c0_30] : memref<1x1x4x128xf32, #tpu.memory_space<vmem>>, vector<1x1x4x128xf32>
    %39 = vector.shape_cast %38 : vector<1x1x4x128xf32> to vector<4x128xf32>
    %40 = arith.extui %21 : vector<4x2x128xi1> to vector<4x2x128xi32>
    %41 = arith.sitofp %40 : vector<4x2x128xi32> to vector<4x2x128xf32>
    %cst_31 = arith.constant dense<0.000000e+00> : vector<4x128xf32>
    %42 = vector.multi_reduction <add>, %41, %cst_31 [1] : vector<4x2x128xf32> to vector<4x128xf32>
    %43 = arith.addf %39, %42 : vector<4x128xf32>
    %c0_32 = arith.constant 0 : index
    %c0_33 = arith.constant 0 : index
    %c0_34 = arith.constant 0 : index
    %c0_35 = arith.constant 0 : index
    %44 = vector.load %arg7[%c0_32, %c0_33, %c0_34, %c0_35] : memref<1x1x4x128xf32, #tpu.memory_space<vmem>>, vector<1x1x4x128xf32>
    %45 = vector.shape_cast %44 : vector<1x1x4x128xf32> to vector<4x128xf32>
    %46 = vector.shape_cast %43 : vector<4x128xf32> to vector<1x1x4x128xf32>
    tpu.vector_store %arg7[%c0_32, %c0_33, %c0_34, %c0_35], %46 {strides = array<i32>} : memref<1x1x4x128xf32, #tpu.memory_space<vmem>>, vector<1x1x4x128xf32>,
    return
  }
  func.func @transform_0(%arg0: i32, %arg1: i32, %arg2: i32) -> (i32, i32, i32, i32) {
    %c0_i32 = arith.constant 0 : i32
    %c0_i32_0 = arith.constant 0 : i32
    %c0_i32_1 = arith.constant 0 : i32
    return %arg0, %c0_i32, %arg2, %c0_i32_0 : i32, i32, i32, i32
  }
  func.func @transform_1(%arg0: i32, %arg1: i32, %arg2: i32) -> (i32, i32, i32) {
    %c0_i32 = arith.constant 0 : i32
    %c0_i32_0 = arith.constant 0 : i32
    return %arg0, %arg2, %c0_i32 : i32, i32, i32
  }
  func.func @transform_2(%arg0: i32, %arg1: i32, %arg2: i32) -> (i32, i32, i32, i32) {
    %c0_i32 = arith.constant 0 : i32
    %c0_i32_0 = arith.constant 0 : i32
    %c0_i32_1 = arith.constant 0 : i32
    return %arg0, %arg1, %c0_i32, %c0_i32_0 : i32, i32, i32, i32
  }
  func.func @transform_3(%arg0: i32, %arg1: i32, %arg2: i32) -> (i32, i32, i32, i32) {
    %c0_i32 = arith.constant 0 : i32
    %c0_i32_0 = arith.constant 0 : i32
    %c0_i32_1 = arith.constant 0 : i32
    return %arg0, %arg1, %c0_i32, %c0_i32_0 : i32, i32, i32, i32
  }
  func.func @transform_4(%arg0: i32, %arg1: i32, %arg2: i32) -> (i32, i32, i32, i32) {
    %c0_i32 = arith.constant 0 : i32
    %c0_i32_0 = arith.constant 0 : i32
    %c0_i32_1 = arith.constant 0 : i32
    return %arg0, %arg1, %c0_i32, %c0_i32_0 : i32, i32, i32, i32
  }
}

</mosaic_0001>

<bundles_post_ra>
// kernel: tpu_custom_call.1
= control target key start
LH: loop header
LB: loop body
LE: loop exit
PB: predicated region body
PF: predicated region fallthrough
CT: control target
= control target key end

     0   :  { %s1351_s0 = inlined_call_operand.hbm [shape: f32[2,4,2,128], index: 0, kind: input, shape index: {}]   ;;  %s1352_s1 = inlined_call_operand.hbm [shape: s8[2,2,128], index: 1, kind: input, shape index: {}]   ;;  %s1353_s2 = inlined_call_operand.hbm [shape: f32[2,1,4,128], index: 2, kind: output, shape index: {0}]   ;;  %s1354_s3 = inlined_call_operand.hbm [shape: f32[2,1,4,128], index: 3, kind: output, shape index: {1}]   ;;  %s1355_s4 = inlined_call_operand.hbm [shape: f32[2,1,4,128], index: 4, kind: output, shape index: {2}]  }
   0x1   :  { %1359 = sst [smem:[#allocation16_spill]] %s1351_s0 }
   0x2   :  { %10 = vsyncpa [#allocation3], 0 }
   0x3   :  { %12 = vsyncpa [#allocation3 + $0x1], 0 }
   0x4   :  { %13 = vsyncpa [#allocation6], 0 }
   0x5   :  { %15 = vsyncpa [#allocation6 + $0x1], 0 }
   0x6   :  { %16 = vsyncpa [#allocation4], 0 }
   0x7   :  { %18 = vsyncpa [#allocation4 + $0x1], 0 }
   0x8   :  { %19 = vsyncpa [#allocation9], 0 }
   0x9   :  { %21 = vsyncpa [#allocation9 + $0x1], 0  ;;  %s1073_s15 = smov 0   ;;  %s1075_s16 = smov 0  }
   0xa   :  { %s1077_s17 = smov 0   ;;  %s1079_s18 = smov 0  }
   0xb   :  { %s1081_s19 = smov 0   ;;  %s1083_s20 = smov 0  }
   0xc LB: > { %s1104_s21 = sadd.s32 4294967295, %s1043_s20   ;;  %s1356_s22 = sadd.s32 4294967294, %s1043_s20   ;;  %s1043_s20 = sphi %s1083_s20, %s27_s20   ;;  %s1039_s19 = sphi %s1081_s19, %s1375_s19   ;;  %s1035_s18 = sphi %s1079_s18, %s1374_s18   ;;  %s1031_s17 = sphi %s1077_s17, %s1373_s17   ;;  %s1027_s16 = sphi %s1075_s16, %s1372_s16   ;;  %s1023_s15 = sphi %s1073_s15, %s1371_s15  }
   0xd   : > { %s46_s23 = sadd.s32 1, %s1039_s19  ;;  %s55_s24 = sadd.s32 1, %s1031_s17 }
   0xe   : > { %p48_p0 = scmp.ge.s32.totalorder %s46_s23, 2  ;;  %p62_p1 = scmp.ne.s32.totalorder %s1031_s17, %s1027_s16 }
   0xf   : > { %p63_p2 = scmp.eq.s32.totalorder %s1043_s20, 0  ;;  %p68_p3 = scmp.ne.s32.totalorder %s1027_s16, %s1023_s15 }
  0x10   : > { %s1377_s23 = smov (%p48_p0, %s46_s23), 0  ;;  %p69_p5 = scmp.eq.s32.totalorder %s1104_s21, 0 }
  0x11   : > { %p1116_p4 = por %p63_p2, %p62_p1  ;;  %s50_s26 = ssub.s32 %s1039_s19, %s1377_s23 }
  0x12   : > { %p122_p6 = scmp.eq.s32.totalorder %s1104_s21, 1  ;;  %p53_p7 = scmp.eq.s32.totalorder %s50_s26, 0 }
  0x13   : > { %p1124_p8 = por %p69_p5, %p68_p3  ;;  %p128_p10 = scmp.eq.s32.totalorder %s1356_s22, 1 }
  0x14   : > { %p1128_p9 = por %p122_p6, %p62_p1  ;;  %p725_p12 = scmp.ge.s32.totalorder %s1043_s20, 2 }
  0x15   : > { %s1135_s29 = scalar_select %p53_p7, %s1031_s17, %s55_s24  }
  0x16   : > { %p1137_p11 = por %p128_p10, %p68_p3  ;;  %p774_p13 = scmp.lt.s32.totalorder %s1043_s20, 2 }
  0x17   : > { %s204_s5 = sand.u32 1, %s1031_s17   ;;  %s746_s7 = sshll.u32 %s1039_s19, 3 }
  0x18   : > { %s726_s6 = sshll.u32 %s204_s5, 3  ;;  %s1364_s0 = sld [smem:[#allocation16_spill]] }
  0x19   : > { %s208_s11 = scalar_lea.vmem [#allocation2], %s726_s6  ;;  %p1150_p0 = pnand %p774_p13, %p1116_p4 }
  0x1a   : > { %s217_s12 = sshll.u32 %s208_s11, 4  ;;  %p729_p1 = scmp.ge.s32.totalorder %s1043_s20, 1  ;;  %s218_s12 = int_to_ptr.vmem [resolvable:$true] %s217_s12 }
  0x1b   : > { %s205_s24 = scalar_lea.sflag [#allocation3], %s204_s5  ;;  %s1045_s26 = smov 32  }
  0x1c   : > { %s1046_s22 = smov 2   ;;  %p243_p2 = scmp.lt.s32.totalorder %s1043_s20, 3 }
  0x1d   : > { %s234_s8 = scalar_lea.hbm %s1352_s1, %s1039_s19  ;;  %s230_s25 = scalar_lea.vmem [#allocation5], %s204_s5 }
  0x1e   : > { %s214_s10 = scalar_lea.hbm %s1364_s0, %s746_s7  ;;  %p244_p3 = pnand %p729_p1, %p243_p2 }
  0x1f   : > { %s215_s13 = sshll.u32 %s214_s10, 4  ;;  %s236_s9 = sshll.u32 %s234_s8, 4  ;;  %s216_s13 = int_to_ptr.hbm [resolvable:$true] %s215_s13  ;;  %s237_s9 = int_to_ptr.hbm [resolvable:$true] %s236_s9 }
  0x20   : > { %760 = dma.hbm_to_vmem [thread:$0]  (!%p1150_p0), %s216_s13, 128, %s218_s12, %s205_s24, %s1045_s26, %s1045_s26, %s1046_s22  }
  0x21   : > { %s238_s10 = sshll.u32 %s230_s25, 4  ;;  %s228_s11 = scalar_lea.sflag [#allocation6], %s204_s5  ;;  %s239_s10 = int_to_ptr.vmem [resolvable:$true] %s238_s10 }
  0x22   : > { %763 = dma.hbm_to_vmem [thread:$0]  (!%p1150_p0), %s237_s9, 16, %s239_s10, %s228_s11  }
  0x23   : > { %247 = sbr.rel (%p244_p3) target bundleno = 150 (0x96), region = 28 }
  0x28   : > { %s1165_s0 = sand.u32 1, %s1027_s16  }
  0x29   : > { %s730_s22 = sshll.u32 %s1165_s0, 3  ;;  %s250_s12 = scalar_lea.sflag [#allocation3], %s1165_s0 }
  0x2a   : > { %s253_s13 = scalar_lea.vmem [#allocation2], %s730_s22 }
  0x2b   : > { %1006 = dma.done.wait (%p1124_p8), %s250_s12, 128  }
  0x2c   : > { %1008 = vsyncadd (%p1124_p8), %s250_s12, 4294967168  ;;  %s260_s5 = scalar_lea.sflag [#allocation6], %s1165_s0  ;;  %s262_s14 = scalar_lea.vmem [#allocation5], %s1165_s0 }
  0x2d   : > { %1010 = dma.done.wait (%p1124_p8), %s260_s5, 16  }
  0x2e   : > { %1012 = vsyncadd (%p1124_p8), %s260_s5, 4294967280  ;;  %s731_s24 = sshll.u32 %s1165_s0, 2  ;;  %v1047_v0 = vmov 0.0   ;;  %vm313_vm0 = vcmask 1041408   ;;  %v309_v1 = vld [vmem:[%s253_s13] sm:$0x3] }
  0x2f   : > { %s1180_s26 = scalar_lea.vmem [#allocation8], %s731_s24  ;;  %s1183_s7 = scalar_lea.vmem [#allocation7], %s731_s24  ;;  %v310_v2 = vld [vmem:[%s253_s13 + $0x2] sm:$0x3]  ;;  %v311_v3 = vld [vmem:[%s253_s13 + $0x4] sm:$0x3] }
  0x30   : > { %307 = vst [vmem:[%s1180_s26] sm:$0xf] %v1047_v0  ;;  %s1186_s6 = scalar_lea.vmem [#allocation10], %s731_s24  ;;  %v312_v4 = vld [vmem:[%s253_s13 + $0x6] sm:$0x3]  ;;  %v314_v5 = vsel %vm313_vm0, %v309_v1, -inf  ;;  %v315_v6 = vsel %vm313_vm0, %v310_v2, -inf }
  0x31   : > { %306 = vst [vmem:[%s1183_s7] sm:$0xf] %v1047_v0  ;;  %v316_v7 = vsel %vm313_vm0, %v311_v3, -inf  ;;  %v317_v8 = vsel %vm313_vm0, %v312_v4, -inf  ;;  %v318_v9 = vmax.f32 %v314_v5, %v315_v6  ;;  %v358_v20 = vld [vmem:[%s262_s14] sm:$0x1]  ;;  %vm401_vm5 = vcmask 1041409  }
  0x32   : > { %308 = vst [vmem:[%s1186_s6] sm:$0xf] %v1047_v0  ;;  %v319_v10 = vmax.f32 %v316_v7, %v317_v8  ;;  %v1195_v21 = vunpack.c.0.s8 %v358_v20  ;;  %vm403_vm6 = vcmask 1042434   ;;  %vm405_vm7 = vcmask 1043459   ;;  %s1247_s27 = sshll.u32 %s1035_s18, 2  ;;  %s501_s25 = sand.u32 1, %s1104_s21  }
  0x33   : > { %s533_s9 = scalar_lea.hbm %s1354_s3, %s1247_s27  ;;  %s548_s22 = scalar_lea.hbm %s1355_s4, %s1247_s27 }
  0x34   : > { %v320_v11 = vmax.f32 %v318_v9, %v319_v10  ;;  %vm360_vm1 = vcmp.eq.s32.totalorder %v1195_v21, 0  ;;  %vm361_vm2 = vcmp.eq.s32.totalorder %v1195_v21, 1  ;;  %vm362_vm3 = vcmp.eq.s32.totalorder %v1195_v21, 2  ;;  %s550_s12 = sshll.u32 %s1186_s6, 4  ;;  %s535_s13 = sshll.u32 %s1180_s26, 4  ;;  %s1267_s12 = int_to_ptr.vmem [resolvable:$true] %s550_s12  ;;  %s536_s13 = int_to_ptr.vmem [resolvable:$true] %s535_s13 }
  0x35   : > { %vm363_vm4 = vcmp.eq.s32.totalorder %v1195_v21, 3  ;;  %v734_v23 = vsel %vm360_vm1, 1.0, %v1047_v0  ;;  %v735_v24 = vsel %vm361_vm2, 1.0, %v1047_v0  ;;  %v736_v27 = vsel %vm362_vm3, 1.0, %v1047_v0  ;;  %s1262_s5 = sshll.u32 %s533_s9, 4  ;;  %s1265_s14 = sshll.u32 %s548_s22, 4  ;;  %s538_s5 = int_to_ptr.hbm [resolvable:$true] %s1262_s5 }
  0x36   : > { %v321_v12 = vsub.f32 %v309_v1, %v320_v11  ;;  %v322_v13 = vsub.f32 %v310_v2, %v320_v11  ;;  %v323_v14 = vsub.f32 %v311_v3, %v320_v11  ;;  %v324_v15 = vsub.f32 %v312_v4, %v320_v11  ;;  %1366 = sst [smem:[#allocation15_spill]] %s1265_s14  ;;  %s518_s18 = scalar_lea.hbm %s1353_s2, %s1247_s27 }
  0x37   : > { %v458_v28 = vsel %vm313_vm0, %v734_v23, 0.0  ;;  %v465_v29 = vsel %vm313_vm0, %v735_v24, 0.0  ;;  %v737_v32 = vsel %vm363_vm4, 1.0, %v1047_v0  ;;  %v472_v38 = vsel %vm313_vm0, %v736_v27, 0.0  ;;  %s520_s8 = sshll.u32 %s1183_s7, 4  ;;  %s1280_s9 = sshll.u32 %s518_s18, 4  ;;  %s521_s8 = int_to_ptr.vmem [resolvable:$true] %s520_s8  ;;  %s523_s9 = int_to_ptr.hbm [resolvable:$true] %s1280_s9 }
  0x38   : > { %v325_v16 = vmul.f32 1.442695, %v321_v12  ;;  %v327_v17 = vmul.f32 1.442695, %v322_v13  ;;  %v329_v18 = vmul.f32 1.442695, %v323_v14 }
  0x39   : > { %v331_v19 = vmul.f32 1.442695, %v324_v15  ;;  %v459_v33 = vrot.slane %v458_v28, 4  ;;  %v466_v34 = vrot.slane %v465_v29, 4  ;;  %v479_v39 = vsel %vm313_vm0, %v737_v32, 0.0  ;;  %s502_s27 = scalar_lea.sflag [#allocation9], %s501_s25 }
  0x3a   : > { %827 = vpow2.f32 %v325_v16  ;;  %v473_v43 = vrot.slane %v472_v38, 4  ;;  %v480_v45 = vrot.slane %v479_v39, 4  ;;  %v449_v3 = vld [vmem:[%s1186_s6] sm:$0xf]  ;;  %s911_s10 = sshra.s32 %s538_s5, 4  ;;  %s912_s10 = int_to_ptr.hbm [resolvable:$true] %s911_s10 }
  0x3b   : > { %829 = vpow2.f32 %v327_v17  ;;  %v460_v41 = vadd.f32 %v459_v33, %v458_v28  ;;  %v467_v42 = vadd.f32 %v466_v34, %v465_v29  ;;  %s913_s11 = scalar_lea.hbm %s912_s10, 4  ;;  %p918_p7 = scmp.lt.s32.totalorder %s912_s10, %s1354_s3 }
  0x3c   : > { %831 = vpow2.f32 %v329_v18  ;;  %v474_v48 = vadd.f32 %v473_v43, %v472_v38  ;;  %v481_v50 = vadd.f32 %v480_v45, %v479_v39  ;;  %p914_p4 = scmp.ne.s32.totalorder %s912_s10, %s913_s11 }
  0x3d   : > { %833 = vpow2.f32 %v331_v19  ;;  %v461_v46 = vrot.slane %v460_v41, 2  ;;  %v468_v47 = vrot.slane %v467_v42, 2 }
  0x3e   : > { %v475_v53 = vrot.slane %v474_v48, 2  ;;  %v482_v57 = vrot.slane %v481_v50, 2  ;;  %p915_p5 = pnand %p914_p4, %p1128_p9 }
  0x3f   : > { %v462_v51 = vadd.f32 %v461_v46, %v460_v41  ;;  %v469_v52 = vadd.f32 %v468_v47, %v467_v42 }
  0x40   : > { %v1201_v22 = vpop.eup %827  ;;  %v476_v56 = vadd.f32 %v475_v53, %v474_v48  ;;  %v483_v61 = vadd.f32 %v482_v57, %v481_v50  ;;  %p916_p6 = pneg %p915_p5 }
  0x41   : > { %v1207_v25 = vpop.eup %829  ;;  %v333_v26 = vsel %vm313_vm0, %v1201_v22, 0.0  ;;  %v463_v54 = vrot.slane %v462_v51, 1  ;;  %v470_v55 = vrot.slane %v469_v52, 1 }
  0x42   : > { %v832_v30 = vpop.eup %831  ;;  %v334_v31 = vsel %vm313_vm0, %v1207_v25, 0.0  ;;  %v477_v60 = vrot.slane %v476_v56, 1  ;;  %v484_v63 = vrot.slane %v483_v61, 1 }
  0x43   : > { %v834_v35 = vpop.eup %833  ;;  %v335_v36 = vadd.f32 %v334_v31, %v333_v26  ;;  %v336_v37 = vsel %vm313_vm0, %v832_v30, 0.0  ;;  %v464_v58 = vadd.f32 %v463_v54, %v462_v51  ;;  %v471_v59 = vadd.f32 %v470_v55, %v469_v52 }
  0x44   : > { %v338_v40 = vsel %vm313_vm0, %v834_v35, 0.0  ;;  %v478_v62 = vadd.f32 %v477_v60, %v476_v56  ;;  %v485_v4 = vadd.f32 %v484_v63, %v483_v61 }
  0x45   : > { %v337_v44 = vadd.f32 %v336_v37, %v335_v36  ;;  %v490_v0 = vsel %vm401_vm5, %v471_v59, %v464_v58 }
  0x46   : > { %v491_v5 = vsel %vm403_vm6, %v478_v62, %v490_v0 }
  0x47   : > { %v339_v49 = vadd.f32 %v338_v40, %v337_v44  ;;  %v492_v9 = vsel %vm405_vm7, %v485_v4, %v491_v5 }
  0x48   : > { %v494_v10 = vadd.f32 %v492_v9, %v449_v3 }
  0x49   : > { %835 = vrcp.f32 %v339_v49  ;;  %vm345_vm8 = vweird.f32 %v339_v49  ;;  %v351_v6 = vand.u32 2147483648, %v339_v49  ;;  %v349_v8 = vand.u32 2147483647, %v339_v49 }
  0x4a   : > { %495 = vst [vmem:[%s1186_s6] sm:$0xf] %v494_v10 }
  0x4b   : > { %v352_v12 = vor.u32 1.1754944e-38, %v351_v6  ;;  %vm350_vm11 = vcmp.eq.f32.partialorder %v349_v8, 8.507059e+37  ;;  %v410_v8 = vld [vmem:[%s1180_s26] sm:$0xf] }
  0x4f   : > { %v836_v1 = vpop.eup %835 }
  0x50   : > { %v341_v2 = vmul.f32 %v836_v1, %v339_v49  ;;  %vm346_vm9 = vweird.f32 %v836_v1 }
  0x51   : > { %vm347_vm10 = vmor %vm345_vm8, %vm346_vm9 }
  0x52   : > { %v342_v7 = vsub.f32 1.0, %v341_v2 }
  0x54   : > { %v343_v11 = vmul.f32 %v836_v1, %v342_v7 }
  0x56   : > { %v344_v13 = vadd.f32 %v836_v1, %v343_v11 }
  0x58   : > { %v348_v14 = vsel %vm347_vm10, %v836_v1, %v344_v13 }
  0x59   : > { %v353_v15 = vsel %vm350_vm11, %v352_v12, %v348_v14 }
  0x5a   : > { %v354_v16 = vmul.f32 %v1201_v22, %v353_v15  ;;  %v355_v17 = vmul.f32 %v1207_v25, %v353_v15  ;;  %v356_v18 = vmul.f32 %v832_v30, %v353_v15  ;;  %v357_v19 = vmul.f32 %v834_v35, %v353_v15 }
  0x5c   : > { %v411_v20 = vsel %vm313_vm0, %v354_v16, 0.0  ;;  %v418_v23 = vsel %vm313_vm0, %v355_v17, 0.0  ;;  %v425_v24 = vsel %vm313_vm0, %v356_v18, 0.0  ;;  %v432_v26 = vsel %vm313_vm0, %v357_v19, 0.0 }
  0x5d   : > { %v412_v27 = vrot.slane %v411_v20, 4  ;;  %v419_v28 = vrot.slane %v418_v23, 4  ;;  %v426_v29 = vrot.slane %v425_v24, 4  ;;  %v433_v31 = vrot.slane %v432_v26, 4 }
  0x5e   : > { %v365_v32 = vsel %vm360_vm1, %v354_v16, 0.0  ;;  %v366_v22 = vsel %vm361_vm2, %v355_v17, 0.0  ;;  %v367_v25 = vsel %vm362_vm3, %v356_v18, 0.0  ;;  %v368_v30 = vsel %vm363_vm4, %v357_v19, 0.0 }
  0x5f   : > { %v413_v33 = vadd.f32 %v412_v27, %v411_v20  ;;  %v420_v34 = vadd.f32 %v419_v28, %v418_v23  ;;  %v427_v35 = vadd.f32 %v426_v29, %v425_v24  ;;  %v434_v36 = vadd.f32 %v433_v31, %v432_v26  ;;  %v364_v23 = vld [vmem:[%s1183_s7] sm:$0xf] }
  0x60   : > { %v369_v37 = vsel %vm313_vm0, %v365_v32, 0.0  ;;  %v376_v38 = vsel %vm313_vm0, %v366_v22, 0.0  ;;  %v383_v39 = vsel %vm313_vm0, %v367_v25, 0.0  ;;  %v390_v40 = vsel %vm313_vm0, %v368_v30, 0.0 }
  0x61   : > { %v414_v41 = vrot.slane %v413_v33, 2  ;;  %v421_v42 = vrot.slane %v420_v34, 2  ;;  %v428_v43 = vrot.slane %v427_v35, 2  ;;  %v435_v44 = vrot.slane %v434_v36, 2 }
  0x62   : > { %v370_v45 = vrot.slane %v369_v37, 4  ;;  %v377_v21 = vrot.slane %v376_v38, 4  ;;  %v384_v46 = vrot.slane %v383_v39, 4  ;;  %v391_v47 = vrot.slane %v390_v40, 4 }
  0x63   : > { %v415_v48 = vadd.f32 %v414_v41, %v413_v33  ;;  %v422_v49 = vadd.f32 %v421_v42, %v420_v34  ;;  %v429_v50 = vadd.f32 %v428_v43, %v427_v35  ;;  %v436_v51 = vadd.f32 %v435_v44, %v434_v36 }
  0x64   : > { %v371_v52 = vadd.f32 %v370_v45, %v369_v37  ;;  %v378_v53 = vadd.f32 %v377_v21, %v376_v38  ;;  %v385_v54 = vadd.f32 %v384_v46, %v383_v39  ;;  %v392_v55 = vadd.f32 %v391_v47, %v390_v40 }
  0x65   : > { %v416_v56 = vrot.slane %v415_v48, 1  ;;  %v423_v57 = vrot.slane %v422_v49, 1  ;;  %v430_v58 = vrot.slane %v429_v50, 1  ;;  %v437_v59 = vrot.slane %v436_v51, 1 }
  0x66   : > { %v372_v60 = vrot.slane %v371_v52, 2  ;;  %v379_v61 = vrot.slane %v378_v53, 2  ;;  %v386_v62 = vrot.slane %v385_v54, 2  ;;  %v393_v63 = vrot.slane %v392_v55, 2 }
  0x67   : > { %v417_v0 = vadd.f32 %v416_v56, %v415_v48  ;;  %v424_v1 = vadd.f32 %v423_v57, %v422_v49  ;;  %v431_v2 = vadd.f32 %v430_v58, %v429_v50  ;;  %v438_v3 = vadd.f32 %v437_v59, %v436_v51 }
  0x68   : > { %v373_v4 = vadd.f32 %v372_v60, %v371_v52  ;;  %v380_v5 = vadd.f32 %v379_v61, %v378_v53  ;;  %v387_v6 = vadd.f32 %v386_v62, %v385_v54  ;;  %v394_v7 = vadd.f32 %v393_v63, %v392_v55 }
  0x69   : > { %v443_v9 = vsel %vm401_vm5, %v424_v1, %v417_v0 }
  0x6a   : > { %v444_v10 = vsel %vm403_vm6, %v431_v2, %v443_v9  ;;  %v374_v11 = vrot.slane %v373_v4, 1  ;;  %v381_v12 = vrot.slane %v380_v5, 1  ;;  %v388_v13 = vrot.slane %v387_v6, 1 }
  0x6b   : > { %v445_v14 = vsel %vm405_vm7, %v438_v3, %v444_v10  ;;  %v395_v15 = vrot.slane %v394_v7, 1 }
  0x6c   : > { %v447_v16 = vadd.f32 %v445_v14, %v410_v8  ;;  %v375_v17 = vadd.f32 %v374_v11, %v373_v4  ;;  %v382_v18 = vadd.f32 %v381_v12, %v380_v5  ;;  %v389_v19 = vadd.f32 %v388_v13, %v387_v6 }
  0x6d   : > { %v396_v20 = vadd.f32 %v395_v15, %v394_v7 }
  0x6e   : > { %448 = vst [vmem:[%s1180_s26] sm:$0xf] %v447_v16  ;;  %v402_v24 = vsel %vm401_vm5, %v382_v18, %v375_v17  ;;  %s917_s26 = scalar_lea.hbm %s1354_s3, 8 }
  0x6f   : > { %v404_v26 = vsel %vm403_vm6, %v389_v19, %v402_v24  ;;  %p919_p8 = scmp.lt.s32.totalorder %s917_s26, %s913_s11 }
  0x71   : > { %p920_p10 = por %p919_p8, %p918_p7 }
  0x73   : > { %p921_p13 = pnand %p920_p10, %p916_p6 }
  0x75   : > { %924 = shalt.err (!%p921_p13)
}
  0x76   : > { %s1367_s21 = sld [smem:[#allocation15_spill]]  ;;  %v406_v27 = vsel %vm405_vm7, %v396_v20, %v404_v26  ;;  %s945_s11 = scalar_lea.hbm %s1355_s4, 8 }
  0x77   : > { %752 = dma.vmem_to_hbm [thread:$0]  (%p1128_p9), %s536_s13, 64, %s538_s5, %s502_s27  }
  0x7c   : > { %s1368_s25 = int_to_ptr.hbm [resolvable:$true] %s1367_s21 }
  0x7d   : > { %s939_s18 = sshra.s32 %s1368_s25, 4  ;;  %s940_s18 = int_to_ptr.hbm [resolvable:$true] %s939_s18 }
  0x7e   : > { %s941_s22 = scalar_lea.hbm %s940_s18, 4  ;;  %p946_p3 = scmp.lt.s32.totalorder %s940_s18, %s1355_s4 }
  0x7f   : > { %p942_p0 = scmp.ne.s32.totalorder %s940_s18, %s941_s22  ;;  %p947_p4 = scmp.lt.s32.totalorder %s945_s11, %s941_s22 }
  0x81   : > { %p943_p1 = pnand %p942_p0, %p1128_p9  ;;  %p948_p5 = por %p947_p4, %p946_p3 }
  0x83   : > { %p944_p2 = pneg %p943_p1 }
  0x85   : > { %p949_p6 = pnand %p948_p5, %p944_p2 }
  0x87   : > { %952 = shalt.err (!%p949_p6)
}
  0x88   : > { %s1369_s13 = smov %s1368_s25  ;;  %v408_v28 = vadd.f32 %v406_v27, %v364_v23  ;;  %s497_s5 = scalar_lea.sflag [#allocation4], %s1165_s0 }
  0x89   : > { %753 = dma.vmem_to_hbm [thread:$0]  (%p1128_p9), %s1267_s12, 64, %s1369_s13, %s502_s27  }
  0x8a   : > { %409 = vst [vmem:[%s1183_s7] sm:$0xf] %v408_v28  ;;  %s967_s6 = sshra.s32 %s523_s9, 4  ;;  %s973_s22 = scalar_lea.hbm %s1353_s2, 8  ;;  %s968_s6 = int_to_ptr.hbm [resolvable:$true] %s967_s6 }
  0x8b   : > { %s969_s25 = scalar_lea.hbm %s968_s6, 4  ;;  %p974_p13 = scmp.lt.s32.totalorder %s968_s6, %s1353_s2 }
  0x8c   : > { %p970_p7 = scmp.ne.s32.totalorder %s968_s6, %s969_s25  ;;  %p975_p0 = scmp.lt.s32.totalorder %s973_s22, %s969_s25 }
  0x8e   : > { %p971_p8 = pnand %p970_p7, %p1128_p9  ;;  %p976_p1 = por %p975_p0, %p974_p13 }
  0x90   : > { %p972_p10 = pneg %p971_p8 }
  0x92   : > { %p977_p2 = pnand %p976_p1, %p972_p10 }
  0x94   : > { %980 = shalt.err (!%p977_p2)
}
  0x95   : > { %751 = dma.vmem_to_hbm [thread:$0]  (%p1128_p9), %s521_s8, 64, %s523_s9, %s497_s5  }
  0x96 PF: > { %s564_s0 = sand.u32 1, %s1023_s15   ;;  %p765_p3 = pnand %p725_p12, %p1137_p11 }
  0x97   : > { %s565_s7 = scalar_lea.sflag [#allocation4], %s564_s0 }
  0x98   : > { %p766_p4 = pneg %p765_p3 }
  0x9a   : > { %1014 = dma.done.wait (%p766_p4), %s565_s7, 64  }
  0x9b   : > { %1016 = vsyncadd (%p766_p4), %s565_s7, 4294967232  ;;  %s1370_s12 = sadd.s32 4294967294, %s1043_s20  }
  0x9c   : > { %s574_s27 = sand.u32 1, %s1370_s12  }
  0x9d   : > { %s575_s11 = scalar_lea.sflag [#allocation9], %s574_s27 }
  0x9e   : > { %1018 = dma.done.wait (%p766_p4), %s575_s11, 128  }
  0x9f   : > { %1020 = vsyncadd (%p766_p4), %s575_s11, 4294967168  ;;  %s27_s20 = sadd.s32 1, %s1043_s20   ;;  %s1371_s15 = smov %s1027_s16 }
  0xa0   : > { %p24_p9 = scmp.ge.s32.totalorder %s27_s20, 4   ;;  %s1372_s16 = smov %s1031_s17 }
  0xa1   : > { %s1373_s17 = smov %s1135_s29  ;;  %s1374_s18 = smov %s1039_s19 }
  0xa2   : > { %s1375_s19 = smov %s1377_s23  ;;  %26 = sbr.rel (!%p24_p9) target bundleno = 12 (0xc), region = 122 }
  0xa7   :  { %591 = vsyncpa [#allocation3], 1 }
  0xa8   :  { %593 = vsyncpa [#allocation3 + $0x1], 1 }
  0xa9   :  { %594 = vsyncpa [#allocation6], 1 }
  0xaa   :  { %596 = vsyncpa [#allocation6 + $0x1], 1 }
  0xab   :  { %597 = vsyncpa [#allocation4], 1 }
  0xac   :  { %599 = vsyncpa [#allocation4 + $0x1], 1 }
  0xad   :  { %600 = vsyncpa [#allocation9], 1 }
  0xae   :  { %602 = vsyncpa [#allocation9 + $0x1], 1 }

</bundles_post_ra>
